<compile_context>
chip_gen: v6e
topology: v6e:2x2x1
jax: 0.10.0
libtpu: 0.0.40
codegen_flags: <defaults>
</compile_context>

<pallas_src>
import functools
import math
from typing import NamedTuple

import jax
import jax.numpy as jnp
from jax.experimental import pallas as pl
from jax.experimental.pallas import tpu as pltpu


_TB_PREF = 512               # preferred batch tile (sublane dim)
_TK_PREF = 2048              # preferred reduction (feature) tile (lane-dim aligned)
_W1_RESIDENT_BYTES = 12 << 20   # keep W1 VMEM-resident below this size
_X_FULL_TILE_BYTES = 8 << 20    # single-shot (no K axis) if the x tile fits


def _round_up(x, m):
    return (x + m - 1) // m * m


def _cdiv(a, b):
    return (a + b - 1) // b


def _vmem_cap_bytes():
    """Physical-VMEM-aware clamp: ~96 MiB on v5e/v6e (128 MiB), ~48 MiB on v7x (64 MiB)."""
    cap = 64 << 20                      # conservative default (v7x per-TC)
    try:
        info = pltpu.get_tpu_info()
        c = getattr(info, "vmem_capacity_bytes", None)
        if c:
            cap = int(c)
    except Exception:                   # query unavailable -> keep conservative default
        pass
    return int(min((cap * 3) // 4, 100 << 20))


class _Plan(NamedTuple):
    tb: int          # batch tile
    nb: int          # number of batch tiles
    b_pad: int       # padded batch
    tk: int          # reduction tile (== D_final when nk == 1)
    nk: int          # number of reduction tiles
    w1_resident: bool


def _make_plan(B, D_final, H_pad, tk, itemsize):
    """All-Python (trace-time) tiling decisions."""
    b_align = 16 if itemsize == 2 else 8          # bf16 packs 16 sublanes
    B_al = _round_up(max(B, b_align), b_align)
    TB = min(B_al, _TB_PREF)
    B_pad = _round_up(B_al, TB)
    nb = B_pad // TB
    # v7x: keep >= 2 batch tiles on the "parallel" axis so both TensorCores
    # get work; the extra sequential grid step is ~free on v5e/v6e (1 TC).
    if nb == 1 and B_pad >= 2 * b_align:
        TB = _round_up(_cdiv(B_pad, 2), b_align)
        B_pad = _round_up(B_pad, TB)
        nb = B_pad // TB

    w1_resident = D_final * H_pad * itemsize <= _W1_RESIDENT_BYTES
    if w1_resident and TB * D_final * itemsize <= _X_FULL_TILE_BYTES:
        # Whole feature dim in one MXU sweep: no K grid axis, no scratch.
        return _Plan(TB, nb, B_pad, D_final, 1, True)

    nk = D_final // tk          # prepare_params guarantees tk | D_final
    return _Plan(TB, nb, B_pad, tk, nk, w1_resident)


# --------------------------------------------------------------------------
# Kernels
# --------------------------------------------------------------------------
def _mlp_kernel_single(x_ref, w1_ref, b1_ref, w2_ref, b2_ref, o_ref):
    """relu(x @ W1 + b1) @ W2 + b2 with the whole feature dim in one pass."""
    h = jnp.dot(x_ref[...], w1_ref[...], preferred_element_type=jnp.float32)
    h = jnp.maximum(h + b1_ref[...], 0.0)                       # bias + ReLU (VPU)
    o = jnp.dot(h.astype(w2_ref.dtype), w2_ref[...],
                preferred_element_type=jnp.float32)
    o_ref[...] = (o + b2_ref[...]).astype(o_ref.dtype)


def _mlp_kernel_ktiled(x_ref, w1_ref, b1_ref, w2_ref, b2_ref, o_ref, acc_ref,
                       *, tk, w1_resident):
    """Same computation with a K (feature) reduction grid axis.

    grid = (batch_tiles, k_tiles). If `w1_resident`, w1_ref holds the FULL
    (D_final, H_pad) weight (fetched from HBM exactly once) and the current
    K chunk is sliced in-kernel; otherwise w1_ref is the streamed (tk, H_pad)
    block for this k.
    """
    k = pl.program_id(1)
    if w1_resident:
        off = pl.multiple_of(k * tk, 128)
        w1_blk = w1_ref[pl.ds(off, tk), :]
    else:
        w1_blk = w1_ref[...]

    part = jnp.dot(x_ref[...], w1_blk, preferred_element_type=jnp.float32)

    @pl.when(k == 0)
    def _():
        acc_ref[...] = part            # direct write: no zero-init round trip

    @pl.when(k != 0)
    def _():
        acc_ref[...] += part

    @pl.when(k == pl.num_programs(1) - 1)
    def _():
        h = jnp.maximum(acc_ref[...] + b1_ref[...], 0.0)
        o = jnp.dot(h.astype(w2_ref.dtype), w2_ref[...],
                    preferred_element_type=jnp.float32)
        o_ref[...] = (o + b2_ref[...]).astype(o_ref.dtype)


# --------------------------------------------------------------------------
# Parameter preparation (done ONCE, outside the per-forward hot path)
# --------------------------------------------------------------------------
def prepare_params(w1, b1, w2, b2, *, use_bf16=False):
    """Pad parameters to TPU-friendly tiles; optionally cast x/W1 path to bf16."""
    D, hidden = w1.shape
    num_classes = w2.shape[1]
    H_pad = _round_up(max(hidden, 128), 128)
    C_pad = _round_up(max(num_classes, 128), 128)
    D_pad = _round_up(max(D, 128), 128)

    # Reduction-tile choice (batch-independent): prefer a tk that divides the
    # 128-aligned feature dim so the activation needs no column padding.
    tk = min(D_pad, _TK_PREF)
    while D_pad % tk != 0:
        tk -= 128
    if tk < 512 and D_pad > _TK_PREF:
        tk = _TK_PREF                  # rare: accept column padding instead
    D_final = _round_up(D_pad, tk)

    w_dtype = jnp.bfloat16 if use_bf16 else jnp.float32
    w1_p = jnp.zeros((D_final, H_pad), w_dtype).at[:D, :hidden].set(
        w1.astype(w_dtype))
    b1_p = jnp.zeros((1, H_pad), jnp.float32).at[0, :hidden].set(
        b1.astype(jnp.float32))
    w2_p = jnp.zeros((H_pad, C_pad), jnp.float32).at[:hidden, :num_classes].set(
        w2.astype(jnp.float32))
    b2_p = jnp.zeros((1, C_pad), jnp.float32).at[0, :num_classes].set(
        b2.astype(jnp.float32))

    padded = (w1_p, b1_p, w2_p, b2_p)
    meta = dict(num_classes=num_classes, tk=tk)
    return padded, meta


# --------------------------------------------------------------------------
# Forward
# --------------------------------------------------------------------------
@functools.partial(jax.jit, static_argnames=("num_classes", "tk"))
def base_model_forward(x, w1_p, b1_p, w2_p, b2_p, *, num_classes, tk):
    """x: [B, ...] -> logits [B, num_classes] float32."""
    B = x.shape[0]
    D = math.prod(x.shape[1:])

    D_final, H_pad = w1_p.shape
    C_pad = w2_p.shape[1]
    itemsize = jnp.dtype(w1_p.dtype).itemsize

    TB, nb, B_pad, tk_eff, nk, w1_res = _make_plan(B, D_final, H_pad, tk, itemsize)

    # Flatten (row-major, same as torch.flatten) + cast to the W1 dtype.
    x2d = x.reshape(B, D).astype(w1_p.dtype)
    if B_pad != B or D_final != D:
        # TODO(synk): the ragged last batch tile could be masked in-kernel to
        # avoid this copy entirely; padded rows/cols are mathematically inert
        # (zeros) and padded logits are sliced off below.
        x2d = jnp.pad(x2d, ((0, B_pad - B), (0, D_final - D)))

    if nk == 1:
        grid = (nb,)
        in_specs = [
            pl.BlockSpec((TB, D_final), lambda i: (i, 0)),        # x tile
            pl.BlockSpec((D_final, H_pad), lambda i: (0, 0)),     # W1 resident
            pl.BlockSpec((1, H_pad), lambda i: (0, 0)),           # b1 resident
            pl.BlockSpec((H_pad, C_pad), lambda i: (0, 0)),       # W2 resident
            pl.BlockSpec((1, C_pad), lambda i: (0, 0)),           # b2 resident
        ]
        out_spec = pl.BlockSpec((TB, C_pad), lambda i: (i, 0))
        scratch = []
        kernel = _mlp_kernel_single
        dims = ("parallel",)
        w1_reads = 1
        vmem_bytes = (2 * (TB * D_final + D_final * H_pad) * itemsize
                      + 2 * TB * C_pad * 4
                      + 2 * (H_pad * C_pad + H_pad + C_pad) * 4)
    else:
        grid = (nb, nk)
        if w1_res:
            # W1 fetched from HBM exactly once, kept VMEM-resident; slice K in-kernel.
            w1_spec = pl.BlockSpec((D_final, H_pad), lambda i, k: (0, 0))
            w1_block_elems = D_final * H_pad
            w1_reads = 1
        else:
            # Too big to keep resident: stream (tk, H_pad) slabs (re-read per batch tile).
            w1_spec = pl.BlockSpec((tk_eff, H_pad), lambda i, k: (k, 0))
            w1_block_elems = tk_eff * H_pad
            w1_reads = nb
        in_specs = [
            pl.BlockSpec((TB, tk_eff), lambda i, k: (i, k)),       # x tile
            w1_spec,
            pl.BlockSpec((1, H_pad), lambda i, k: (0, 0)),         # b1 resident
            pl.BlockSpec((H_pad, C_pad), lambda i, k: (0, 0)),     # W2 resident
            pl.BlockSpec((1, C_pad), lambda i, k: (0, 0)),         # b2 resident
        ]
        out_spec = pl.BlockSpec((TB, C_pad), lambda i, k: (i, 0))
        scratch = [pltpu.VMEM((TB, H_pad), jnp.float32)]
        kernel = functools.partial(_mlp_kernel_ktiled, tk=tk_eff, w1_resident=w1_res)
        dims = ("parallel", "arbitrary")
        vmem_bytes = (2 * (TB * tk_eff + w1_block_elems) * itemsize
                      + 2 * TB * C_pad * 4
                      + 2 * (H_pad * C_pad + H_pad + C_pad) * 4
                      + TB * H_pad * 4)

    vmem_limit = int(min(max(vmem_bytes + (2 << 20), 8 << 20), _vmem_cap_bytes()))

    cost = pl.CostEstimate(
        flops=2 * B_pad * D_final * H_pad + 2 * B_pad * H_pad * C_pad,
        transcendentals=0,
        bytes_accessed=(B_pad * D_final * itemsize
                        + w1_reads * D_final * H_pad * itemsize
                        + (H_pad * C_pad + H_pad + C_pad) * 4
                        + B_pad * C_pad * 4),
    )

    out_p = pl.pallas_call(
        kernel,
        out_shape=jax.ShapeDtypeStruct((B_pad, C_pad), jnp.float32),
        grid_spec=pltpu.PrefetchScalarGridSpec(
            num_scalar_prefetch=0,
            grid=grid,
            in_specs=in_specs,
            out_specs=out_spec,
            scratch_shapes=scratch,
        ),
        compiler_params=pltpu.CompilerParams(
            dimension_semantics=dims,
            vmem_limit_bytes=vmem_limit,
        ),
        cost_estimate=cost,
    )(x2d, w1_p, b1_p, w2_p, b2_p)

    return out_p[:B, :num_classes]


if __name__ == "__main__":
    # Small shapes consistent with the module's classifier contract.
    B, C, H, W = 2, 4, 16, 16
    num_classes = 10
    hidden = 32
    D = C * H * W

    key = jax.random.PRNGKey(0)
    kx, k1, k2, k3, k4 = jax.random.split(key, 5)

    x = jax.random.normal(kx, (B, C, H, W), dtype=jnp.float32)
    w1 = jax.random.normal(k1, (D, hidden), dtype=jnp.float32) * (2.0 / D) ** 0.5
    b1 = jax.random.normal(k2, (hidden,), dtype=jnp.float32) * 0.01
    w2 = jax.random.normal(k3, (hidden, num_classes), dtype=jnp.float32) * (2.0 / hidden) ** 0.5
    b2 = jax.random.normal(k4, (num_classes,), dtype=jnp.float32) * 0.01

    ref = jnp.maximum(x.reshape(B, D) @ w1 + b1, 0.0) @ w2 + b2

    # f32 path (matches the reference module's numerics).
    params_f32, meta = prepare_params(w1, b1, w2, b2)
    logits = base_model_forward(x, *params_f32, **meta)
    jax.block_until_ready(logits)
    assert logits.shape == (B, num_classes)
    assert jnp.allclose(logits, ref, atol=1e-4, rtol=1e-4)

    # Opt-in bf16 input path (halves HBM traffic on x/W1, f32 accumulation).
    params_bf16, meta_bf16 = prepare_params(w1, b1, w2, b2, use_bf16=True)
    logits_bf16 = base_model_forward(x, *params_bf16, **meta_bf16)
    jax.block_until_ready(logits_bf16)
    assert logits_bf16.shape == (B, num_classes)
    assert jnp.allclose(logits_bf16, ref, atol=1e-1)

    print("KERNEL_OK")
</pallas_src>

<mosaic_0001>
module attributes {stable_mosaic.version = 11 : i64} {
  func.func @_mlp_kernel_single(%arg0: i32, %arg1: memref<8x1024xf32, #tpu.memory_space<vmem>>, %arg2: memref<1024x128xf32, #tpu.memory_space<vmem>>, %arg3: memref<1x128xf32, #tpu.memory_space<vmem>>, %arg4: memref<128x128xf32, #tpu.memory_space<vmem>>, %arg5: memref<1x128xf32, #tpu.memory_space<vmem>>, %arg6: memref<8x128xf32, #tpu.memory_space<vmem>>) attributes {dimension_semantics = [#tpu.dimension_semantics<parallel>], iteration_bounds = array<i64: 1>, scalar_prefetch = 0 : i64, scratch_operands = 0 : i64, tpu.core_type = #tpu.core_type<tc>, window_params = [{transform_indices = @transform_0, window_bounds = array<i64: 8, 1024>}, {pipeline_mode = #tpu.pipeline_mode<synchronous>, transform_indices = @transform_1, window_bounds = array<i64: 1024, 128>}, {pipeline_mode = #tpu.pipeline_mode<synchronous>, transform_indices = @transform_2, window_bounds = array<i64: 1, 128>}, {pipeline_mode = #tpu.pipeline_mode<synchronous>, transform_indices = @transform_3, window_bounds = array<i64: 128, 128>}, {pipeline_mode = #tpu.pipeline_mode<synchronous>, transform_indices = @transform_4, window_bounds = array<i64: 1, 128>}, {transform_indices = @transform_5, window_bounds = array<i64: 8, 128>}]} {
    %c0 = arith.constant 0 : index
    %c0_0 = arith.constant 0 : index
    %0 = vector.load %arg1[%c0, %c0_0] : memref<8x1024xf32, #tpu.memory_space<vmem>>, vector<8x1024xf32>
    %c0_1 = arith.constant 0 : index
    %c0_2 = arith.constant 0 : index
    %1 = vector.load %arg2[%c0_1, %c0_2] : memref<1024x128xf32, #tpu.memory_space<vmem>>, vector<1024x128xf32>
    %cst = arith.constant dense<0.000000e+00> : vector<8x128xf32>
    %2 = tpu.matmul %0, %1, %cst {dimension_numbers = #tpu.dot_dimension_numbers<[1], [0], [0], [1], [0, 0, 1, 1], [], []>} : vector<8x1024xf32>, vector<1024x128xf32>, vector<8x128xf32> -> vector<8x128xf32>
    %c0_3 = arith.constant 0 : index
    %c0_4 = arith.constant 0 : index
    %3 = vector.load %arg3[%c0_3, %c0_4] : memref<1x128xf32, #tpu.memory_space<vmem>>, vector<1x128xf32>
    %4 = vector.broadcast %3 : vector<1x128xf32> to vector<8x128xf32>
    %5 = arith.addf %2, %4 : vector<8x128xf32>
    %cst_5 = arith.constant 0.000000e+00 : f32
    %6 = vector.broadcast %cst_5 : f32 to vector<8x128xf32>
    %7 = arith.maximumf %5, %6 : vector<8x128xf32>
    %c0_6 = arith.constant 0 : index
    %c0_7 = arith.constant 0 : index
    %8 = vector.load %arg4[%c0_6, %c0_7] : memref<128x128xf32, #tpu.memory_space<vmem>>, vector<128x128xf32>
    %cst_8 = arith.constant dense<0.000000e+00> : vector<8x128xf32>
    %9 = tpu.matmul %7, %8, %cst_8 {dimension_numbers = #tpu.dot_dimension_numbers<[1], [0], [0], [1], [0, 0, 1, 1], [], []>} : vector<8x128xf32>, vector<128x128xf32>, vector<8x128xf32> -> vector<8x128xf32>
    %c0_9 = arith.constant 0 : index
    %c0_10 = arith.constant 0 : index
    %10 = vector.load %arg5[%c0_9, %c0_10] : memref<1x128xf32, #tpu.memory_space<vmem>>, vector<1x128xf32>
    %11 = vector.broadcast %10 : vector<1x128xf32> to vector<8x128xf32>
    %12 = arith.addf %9, %11 : vector<8x128xf32>
    %c0_11 = arith.constant 0 : index
    %c0_12 = arith.constant 0 : index
    %13 = vector.load %arg6[%c0_11, %c0_12] : memref<8x128xf32, #tpu.memory_space<vmem>>, vector<8x128xf32>
    tpu.vector_store %arg6[%c0_11, %c0_12], %12 {strides = array<i32>} : memref<8x128xf32, #tpu.memory_space<vmem>>, vector<8x128xf32>,
    return
  }
  func.func @transform_0(%arg0: i32) -> (i32, i32) {
    %c0_i32 = arith.constant 0 : i32
    %c0_i32_0 = arith.constant 0 : i32
    return %arg0, %c0_i32 : i32, i32
  }
  func.func @transform_1(%arg0: i32) -> (i32, i32) {
    %c0_i32 = arith.constant 0 : i32
    %c0_i32_0 = arith.constant 0 : i32
    %c0_i32_1 = arith.constant 0 : i32
    return %c0_i32, %c0_i32_0 : i32, i32
  }
  func.func @transform_2(%arg0: i32) -> (i32, i32) {
    %c0_i32 = arith.constant 0 : i32
    %c0_i32_0 = arith.constant 0 : i32
    %c0_i32_1 = arith.constant 0 : i32
    return %c0_i32, %c0_i32_0 : i32, i32
  }
  func.func @transform_3(%arg0: i32) -> (i32, i32) {
    %c0_i32 = arith.constant 0 : i32
    %c0_i32_0 = arith.constant 0 : i32
    %c0_i32_1 = arith.constant 0 : i32
    return %c0_i32, %c0_i32_0 : i32, i32
  }
  func.func @transform_4(%arg0: i32) -> (i32, i32) {
    %c0_i32 = arith.constant 0 : i32
    %c0_i32_0 = arith.constant 0 : i32
    %c0_i32_1 = arith.constant 0 : i32
    return %c0_i32, %c0_i32_0 : i32, i32
  }
  func.func @transform_5(%arg0: i32) -> (i32, i32) {
    %c0_i32 = arith.constant 0 : i32
    %c0_i32_0 = arith.constant 0 : i32
    return %arg0, %c0_i32 : i32, i32
  }
}

</mosaic_0001>

<bundles_post_ra>
// kernel: base_model_forward.1
= control target key start
LH: loop header
LB: loop body
LE: loop exit
PB: predicated region body
PF: predicated region fallthrough
CT: control target
= control target key end

     0   :  { %10 = vsyncpa [#allocation3], 0  ;;  %s778_s18 = smov [#allocation2]   ;;  %s897_s0 = inlined_call_operand.vmem [shape: f32[8,1024], index: 0, kind: input, shape index: {}]   ;;  %s898_s1 = inlined_call_operand.hbm [shape: f32[1024,128], index: 1, kind: input, shape index: {}]   ;;  %s899_s2 = inlined_call_operand.vmem [shape: f32[1,128], index: 2, kind: input, shape index: {}]   ;;  %s900_s3 = inlined_call_operand.vmem [shape: f32[128,128], index: 3, kind: input, shape index: {}]   ;;  %s901_s4 = inlined_call_operand.vmem [shape: f32[1,128], index: 4, kind: input, shape index: {}]   ;;  %s902_s5 = inlined_call_operand.vmem [shape: f32[8,128], index: 5, kind: output, shape index: {}]  }
   0x1   :  { %s18_s19 = sshll.u32 %s778_s18, 4  ;;  %s19_s19 = int_to_ptr.vmem [resolvable:$true] %s18_s19 }
   0x2   :  { %s764_s20 = scalar_lea.vmem %s19_s19, 16384  ;;  %p769_p1 = scmp.lt.s32.totalorder %s19_s19, %s19_s19 }
   0x3   :  { %p765_p0 = scmp.ne.s32.totalorder %s19_s19, %s764_s20  ;;  %p770_p2 = scmp.lt.s32.totalorder %s764_s20, %s764_s20 }
   0x5   :  { %p771_p3 = por %p770_p2, %p769_p1 }
   0x7   :  { %p772_p4 = pnand %p771_p3, %p765_p0 }
   0x9   :  { %775 = shalt.err (!%p772_p4)
}
   0xa   :  { %s779_s21 = smov 128   ;;  %s780_s22 = smov 8  }
   0xb   :  { %24 = dma.hbm_to_vmem [thread:$0]  %s898_s1, 16384, %s19_s19, [#allocation3], %s779_s21, %s779_s21, %s780_s22  }
   0xc   :  { %776 = dma.done.wait [#allocation3], 16384  }
   0xd   :  { %777 = vsyncadd [#allocation3], 4294950912  ;;  %v73_v0 = vld [vmem:[#allocation2 + $0xf8] sm:$0xff]  ;;  %v72_v4 = vld [vmem:[#allocation2 + $0xf0] sm:$0xff]  ;;  %vm782_vm0 = vmmov 0  }
   0xe   :  { %v105_v1 = vld [vmem:[#allocation2 + $0x1f8] sm:$0xff]  ;;  %559 = vmatprep.subr.mxu0 %v73_v0  ;;  %v104_v5 = vld [vmem:[#allocation2 + $0x1f0] sm:$0xff]  ;;  %v71_v8 = vld [vmem:[#allocation2 + $0xe8] sm:$0xff] }
   0xf   :  { %v57_v2 = vld [vmem:[#allocation2 + $0x78] sm:$0xff]  ;;  %594 = vmatprep.subr.mxu1 %v105_v1  ;;  %v56_v6 = vld [vmem:[#allocation2 + $0x70] sm:$0xff]  ;;  %v103_v9 = vld [vmem:[#allocation2 + $0x1e8] sm:$0xff] }
  0x10   :  { %v89_v3 = vld [vmem:[#allocation2 + $0x178] sm:$0xff]  ;;  %560 = vmatpush3.msra.mxu0 %v57_v2  ;;  %v88_v7 = vld [vmem:[#allocation2 + $0x170] sm:$0xff]  ;;  %v55_v10 = vld [vmem:[#allocation2 + $0x68] sm:$0xff] }
  0x11   :  { %595 = vmatpush3.msra.mxu1 %v89_v3  ;;  %561 = vmatprep.subr.mxu0 %v72_v4  ;;  %v87_v11 = vld [vmem:[#allocation2 + $0x168] sm:$0xff]  ;;  %v70_v12 = vld [vmem:[#allocation2 + $0xe0] sm:$0xff]  ;;  %v69_v16 = vld [vmem:[#allocation2 + $0xd8] sm:$0xff] }
  0x12   :  { %596 = vmatprep.subr.mxu1 %v104_v5  ;;  %562 = vmatpush3.msra.mxu0 %v56_v6  ;;  %v102_v13 = vld [vmem:[#allocation2 + $0x1e0] sm:$0xff]  ;;  %v101_v17 = vld [vmem:[#allocation2 + $0x1d8] sm:$0xff]  ;;  %v68_v20 = vld [vmem:[#allocation2 + $0xd0] sm:$0xff] }
  0x13   :  { %597 = vmatpush3.msra.mxu1 %v88_v7  ;;  %563 = vmatprep.subr.mxu0 %v71_v8  ;;  %v54_v14 = vld [vmem:[#allocation2 + $0x60] sm:$0xff]  ;;  %v53_v18 = vld [vmem:[#allocation2 + $0x58] sm:$0xff]  ;;  %v100_v21 = vld [vmem:[#allocation2 + $0x1d0] sm:$0xff] }
  0x14   :  { %598 = vmatprep.subr.mxu1 %v103_v9  ;;  %v86_v15 = vld [vmem:[#allocation2 + $0x160] sm:$0xff]  ;;  %564 = vmatpush3.msra.mxu0 %v55_v10  ;;  %v85_v19 = vld [vmem:[#allocation2 + $0x158] sm:$0xff]  ;;  %v52_v22 = vld [vmem:[#allocation2 + $0x50] sm:$0xff] }
  0x15   :  { %599 = vmatpush3.msra.mxu1 %v87_v11  ;;  %565 = vmatprep.subr.mxu0 %v70_v12  ;;  %v84_v23 = vld [vmem:[#allocation2 + $0x150] sm:$0xff]  ;;  %v67_v24 = vld [vmem:[#allocation2 + $0xc8] sm:$0xff]  ;;  %v66_v28 = vld [vmem:[#allocation2 + $0xc0] sm:$0xff] }
  0x16   :  { %600 = vmatprep.subr.mxu1 %v102_v13  ;;  %566 = vmatpush3.msra.mxu0 %v54_v14  ;;  %v99_v25 = vld [vmem:[#allocation2 + $0x1c8] sm:$0xff]  ;;  %v98_v29 = vld [vmem:[#allocation2 + $0x1c0] sm:$0xff]  ;;  %v65_v32 = vld [vmem:[#allocation2 + $0xb8] sm:$0xff] }
  0x17   :  { %601 = vmatpush3.msra.mxu1 %v86_v15  ;;  %567 = vmatprep.subr.mxu0 %v69_v16  ;;  %v51_v26 = vld [vmem:[#allocation2 + $0x48] sm:$0xff]  ;;  %v50_v30 = vld [vmem:[#allocation2 + $0x40] sm:$0xff]  ;;  %v97_v33 = vld [vmem:[#allocation2 + $0x1b8] sm:$0xff] }
  0x18   :  { %602 = vmatprep.subr.mxu1 %v101_v17  ;;  %568 = vmatpush3.msra.mxu0 %v53_v18  ;;  %v83_v27 = vld [vmem:[#allocation2 + $0x148] sm:$0xff]  ;;  %v82_v31 = vld [vmem:[#allocation2 + $0x140] sm:$0xff]  ;;  %v49_v34 = vld [vmem:[#allocation2 + $0x38] sm:$0xff] }
  0x19   :  { %603 = vmatpush3.msra.mxu1 %v85_v19  ;;  %569 = vmatprep.subr.mxu0 %v68_v20  ;;  %v81_v35 = vld [vmem:[#allocation2 + $0x138] sm:$0xff]  ;;  %v64_v36 = vld [vmem:[#allocation2 + $0xb0] sm:$0xff]  ;;  %v63_v40 = vld [vmem:[#allocation2 + $0xa8] sm:$0xff] }
  0x1a   :  { %604 = vmatprep.subr.mxu1 %v100_v21  ;;  %570 = vmatpush3.msra.mxu0 %v52_v22  ;;  %v96_v37 = vld [vmem:[#allocation2 + $0x1b0] sm:$0xff]  ;;  %v95_v41 = vld [vmem:[#allocation2 + $0x1a8] sm:$0xff]  ;;  %v62_v44 = vld [vmem:[#allocation2 + $0xa0] sm:$0xff] }
  0x1b   :  { %605 = vmatpush3.msra.mxu1 %v84_v23  ;;  %571 = vmatprep.subr.mxu0 %v67_v24  ;;  %v48_v38 = vld [vmem:[#allocation2 + $0x30] sm:$0xff]  ;;  %v47_v42 = vld [vmem:[#allocation2 + $0x28] sm:$0xff]  ;;  %v94_v45 = vld [vmem:[#allocation2 + $0x1a0] sm:$0xff] }
  0x1c   :  { %606 = vmatprep.subr.mxu1 %v99_v25  ;;  %572 = vmatpush3.msra.mxu0 %v51_v26  ;;  %v80_v39 = vld [vmem:[#allocation2 + $0x130] sm:$0xff]  ;;  %v79_v43 = vld [vmem:[#allocation2 + $0x128] sm:$0xff]  ;;  %v46_v46 = vld [vmem:[#allocation2 + $0x20] sm:$0xff] }
  0x1d   :  { %607 = vmatpush3.msra.mxu1 %v83_v27  ;;  %573 = vmatprep.subr.mxu0 %v66_v28  ;;  %v78_v47 = vld [vmem:[#allocation2 + $0x120] sm:$0xff]  ;;  %v61_v48 = vld [vmem:[#allocation2 + $0x98] sm:$0xff]  ;;  %v60_v52 = vld [vmem:[#allocation2 + $0x90] sm:$0xff] }
  0x1e   :  { %608 = vmatprep.subr.mxu1 %v98_v29  ;;  %574 = vmatpush3.msra.mxu0 %v50_v30  ;;  %v93_v49 = vld [vmem:[#allocation2 + $0x198] sm:$0xff]  ;;  %v92_v53 = vld [vmem:[#allocation2 + $0x190] sm:$0xff]  ;;  %v59_v56 = vld [vmem:[#allocation2 + $0x88] sm:$0xff] }
  0x1f   :  { %609 = vmatpush3.msra.mxu1 %v82_v31  ;;  %575 = vmatprep.subr.mxu0 %v65_v32  ;;  %v45_v50 = vld [vmem:[#allocation2 + $0x18] sm:$0xff]  ;;  %v44_v54 = vld [vmem:[#allocation2 + $0x10] sm:$0xff]  ;;  %v91_v57 = vld [vmem:[#allocation2 + $0x188] sm:$0xff] }
  0x20   :  { %610 = vmatprep.subr.mxu1 %v97_v33  ;;  %576 = vmatpush3.msra.mxu0 %v49_v34  ;;  %v77_v51 = vld [vmem:[#allocation2 + $0x118] sm:$0xff]  ;;  %v76_v55 = vld [vmem:[#allocation2 + $0x110] sm:$0xff]  ;;  %v43_v58 = vld [vmem:[#allocation2 + $0x8] sm:$0xff] }
  0x21   :  { %611 = vmatpush3.msra.mxu1 %v81_v35  ;;  %577 = vmatprep.subr.mxu0 %v64_v36  ;;  %v75_v59 = vld [vmem:[#allocation2 + $0x108] sm:$0xff]  ;;  %v58_v60 = vld [vmem:[#allocation2 + $0x80] sm:$0xff]  ;;  %v37_v2 = vld [vmem:[%s897_s0 + $0x18] sm:$0xff] }
  0x22   :  { %612 = vmatprep.subr.mxu1 %v96_v37  ;;  %578 = vmatpush3.msra.mxu0 %v48_v38  ;;  %v90_v61 = vld [vmem:[#allocation2 + $0x180] sm:$0xff]  ;;  %v35_v63 = vld [vmem:[%s897_s0 + $0x8] sm:$0xff]  ;;  %v137_v3 = vld [vmem:[#allocation2 + $0x2f8] sm:$0xff] }
  0x23   :  { %613 = vmatpush3.msra.mxu1 %v80_v39  ;;  %579 = vmatprep.subr.mxu0 %v63_v40  ;;  %v42_v62 = vld [vmem:[#allocation2] sm:$0xff]  ;;  %v169_v4 = vld [vmem:[#allocation2 + $0x3f8] sm:$0xff]  ;;  %v36_v5 = vld [vmem:[%s897_s0 + $0x10] sm:$0xff] }
  0x24   :  { %614 = vmatprep.subr.mxu1 %v95_v41  ;;  %580 = vmatpush3.msra.mxu0 %v47_v42  ;;  %v74_v0 = vld [vmem:[#allocation2 + $0x100] sm:$0xff]  ;;  %v121_v6 = vld [vmem:[#allocation2 + $0x278] sm:$0xff]  ;;  %v136_v8 = vld [vmem:[#allocation2 + $0x2f0] sm:$0xff] }
  0x25   :  { %615 = vmatpush3.msra.mxu1 %v79_v43  ;;  %581 = vmatprep.subr.mxu0 %v62_v44  ;;  %v34_v1 = vld [vmem:[%s897_s0] sm:$0xff]  ;;  %v153_v7 = vld [vmem:[#allocation2 + $0x378] sm:$0xff]  ;;  %v168_v9 = vld [vmem:[#allocation2 + $0x3f0] sm:$0xff] }
  0x26   :  { %616 = vmatprep.subr.mxu1 %v94_v45  ;;  %582 = vmatpush3.msra.mxu0 %v46_v46  ;;  %v120_v10 = vld [vmem:[#allocation2 + $0x270] sm:$0xff]  ;;  %v135_v12 = vld [vmem:[#allocation2 + $0x2e8] sm:$0xff]  ;;  %v134_v16 = vld [vmem:[#allocation2 + $0x2e0] sm:$0xff] }
  0x27   :  { %617 = vmatpush3.msra.mxu1 %v78_v47  ;;  %583 = vmatprep.subr.mxu0 %v61_v48  ;;  %v152_v11 = vld [vmem:[#allocation2 + $0x370] sm:$0xff]  ;;  %v167_v13 = vld [vmem:[#allocation2 + $0x3e8] sm:$0xff]  ;;  %v166_v17 = vld [vmem:[#allocation2 + $0x3e0] sm:$0xff] }
  0x28   :  { %618 = vmatprep.subr.mxu1 %v93_v49  ;;  %584 = vmatpush3.msra.mxu0 %v45_v50  ;;  %v119_v14 = vld [vmem:[#allocation2 + $0x268] sm:$0xff]  ;;  %v118_v18 = vld [vmem:[#allocation2 + $0x260] sm:$0xff]  ;;  %v133_v20 = vld [vmem:[#allocation2 + $0x2d8] sm:$0xff] }
  0x29   :  { %619 = vmatpush3.msra.mxu1 %v77_v51  ;;  %585 = vmatprep.subr.mxu0 %v60_v52  ;;  %v151_v15 = vld [vmem:[#allocation2 + $0x368] sm:$0xff]  ;;  %v150_v19 = vld [vmem:[#allocation2 + $0x360] sm:$0xff]  ;;  %v165_v21 = vld [vmem:[#allocation2 + $0x3d8] sm:$0xff] }
  0x2a   :  { %620 = vmatprep.subr.mxu1 %v92_v53  ;;  %586 = vmatpush3.msra.mxu0 %v44_v54  ;;  %v117_v22 = vld [vmem:[#allocation2 + $0x258] sm:$0xff]  ;;  %v132_v24 = vld [vmem:[#allocation2 + $0x2d0] sm:$0xff]  ;;  %v131_v28 = vld [vmem:[#allocation2 + $0x2c8] sm:$0xff] }
  0x2b   :  { %621 = vmatpush3.msra.mxu1 %v76_v55  ;;  %587 = vmatprep.subr.mxu0 %v59_v56  ;;  %v149_v23 = vld [vmem:[#allocation2 + $0x358] sm:$0xff]  ;;  %v164_v25 = vld [vmem:[#allocation2 + $0x3d0] sm:$0xff]  ;;  %v163_v29 = vld [vmem:[#allocation2 + $0x3c8] sm:$0xff] }
  0x2c   :  { %622 = vmatprep.subr.mxu1 %v91_v57  ;;  %588 = vmatpush3.msra.mxu0 %v43_v58  ;;  %v116_v26 = vld [vmem:[#allocation2 + $0x250] sm:$0xff]  ;;  %v115_v30 = vld [vmem:[#allocation2 + $0x248] sm:$0xff]  ;;  %v130_v32 = vld [vmem:[#allocation2 + $0x2c0] sm:$0xff] }
  0x2d   :  { %623 = vmatpush3.msra.mxu1 %v75_v59  ;;  %589 = vmatprep.subr.mxu0 %v58_v60  ;;  %v148_v27 = vld [vmem:[#allocation2 + $0x350] sm:$0xff]  ;;  %v147_v31 = vld [vmem:[#allocation2 + $0x348] sm:$0xff]  ;;  %v162_v33 = vld [vmem:[#allocation2 + $0x3c0] sm:$0xff] }
  0x2e   :  { %624 = vmatprep.subr.mxu1 %v90_v61  ;;  %590 = vmatpush3.msra.mxu0 %v42_v62  ;;  %v114_v34 = vld [vmem:[#allocation2 + $0x240] sm:$0xff]  ;;  %v129_v36 = vld [vmem:[#allocation2 + $0x2b8] sm:$0xff]  ;;  %v128_v40 = vld [vmem:[#allocation2 + $0x2b0] sm:$0xff] }
  0x2f   :  { %241 = vmatprep.mubr.f32.mxu0 %v35_v63  ;;  %625 = vmatpush3.msra.mxu1 %v74_v0  ;;  %v146_v35 = vld [vmem:[#allocation2 + $0x340] sm:$0xff]  ;;  %v161_v37 = vld [vmem:[#allocation2 + $0x3b8] sm:$0xff]  ;;  %v160_v41 = vld [vmem:[#allocation2 + $0x3b0] sm:$0xff] }
  0x30   :  { %242 = vmatmul.mubr.f32.vlgmr.msra.gmra.mxu0 %v34_v1  ;;  %311 = vmatprep.mubr.f32.mxu1 %v37_v2  ;;  %v113_v38 = vld [vmem:[#allocation2 + $0x238] sm:$0xff]  ;;  %v112_v42 = vld [vmem:[#allocation2 + $0x230] sm:$0xff]  ;;  %v127_v44 = vld [vmem:[#allocation2 + $0x2a8] sm:$0xff] }
  0x31   :  { %629 = vmatprep.subr.mxu0 %v137_v3  ;;  %664 = vmatprep.subr.mxu1 %v169_v4  ;;  %v145_v39 = vld [vmem:[#allocation2 + $0x338] sm:$0xff]  ;;  %v144_v43 = vld [vmem:[#allocation2 + $0x330] sm:$0xff]  ;;  %v159_v45 = vld [vmem:[#allocation2 + $0x3a8] sm:$0xff] }
  0x32   :  { %312 = vmatmul.mubr.f32.vlgmr.msra.gmra.mxu1 %v36_v5  ;;  %630 = vmatpush3.msra.mxu0 %v121_v6  ;;  %v111_v46 = vld [vmem:[#allocation2 + $0x228] sm:$0xff]  ;;  %v126_v48 = vld [vmem:[#allocation2 + $0x2a0] sm:$0xff]  ;;  %v125_v52 = vld [vmem:[#allocation2 + $0x298] sm:$0xff] }
  0x33   :  { %665 = vmatpush3.msra.mxu1 %v153_v7  ;;  %631 = vmatprep.subr.mxu0 %v136_v8  ;;  %v143_v47 = vld [vmem:[#allocation2 + $0x328] sm:$0xff]  ;;  %v158_v49 = vld [vmem:[#allocation2 + $0x3a0] sm:$0xff]  ;;  %v157_v53 = vld [vmem:[#allocation2 + $0x398] sm:$0xff] }
  0x34   :  { %666 = vmatprep.subr.mxu1 %v168_v9  ;;  %632 = vmatpush3.msra.mxu0 %v120_v10  ;;  %v110_v50 = vld [vmem:[#allocation2 + $0x220] sm:$0xff]  ;;  %v109_v54 = vld [vmem:[#allocation2 + $0x218] sm:$0xff]  ;;  %v124_v56 = vld [vmem:[#allocation2 + $0x290] sm:$0xff]  ;;  %v781_v9 = vmov 0.0  }
  0x35   :  { %667 = vmatpush3.msra.mxu1 %v152_v11  ;;  %633 = vmatprep.subr.mxu0 %v135_v12  ;;  %v142_v51 = vld [vmem:[#allocation2 + $0x320] sm:$0xff]  ;;  %v141_v55 = vld [vmem:[#allocation2 + $0x318] sm:$0xff]  ;;  %v156_v57 = vld [vmem:[#allocation2 + $0x390] sm:$0xff] }
  0x36   :  { %668 = vmatprep.subr.mxu1 %v167_v13  ;;  %634 = vmatpush3.msra.mxu0 %v119_v14  ;;  %v108_v58 = vld [vmem:[#allocation2 + $0x210] sm:$0xff]  ;;  %v123_v60 = vld [vmem:[#allocation2 + $0x288] sm:$0xff]  ;;  %v122_v0 = vld [vmem:[#allocation2 + $0x280] sm:$0xff] }
  0x37   :  { %669 = vmatpush3.msra.mxu1 %v151_v15  ;;  %635 = vmatprep.subr.mxu0 %v134_v16  ;;  %v140_v59 = vld [vmem:[#allocation2 + $0x310] sm:$0xff]  ;;  %v155_v61 = vld [vmem:[#allocation2 + $0x388] sm:$0xff]  ;;  %v154_v1 = vld [vmem:[#allocation2 + $0x380] sm:$0xff] }
  0x38   :  { %670 = vmatprep.subr.mxu1 %v166_v17  ;;  %636 = vmatpush3.msra.mxu0 %v118_v18  ;;  %v107_v62 = vld [vmem:[#allocation2 + $0x208] sm:$0xff]  ;;  %v106_v2 = vld [vmem:[#allocation2 + $0x200] sm:$0xff]  ;;  %v41_v5 = vld [vmem:[%s897_s0 + $0x38] sm:$0xff] }
  0x39   :  { %671 = vmatpush3.msra.mxu1 %v150_v19  ;;  %637 = vmatprep.subr.mxu0 %v133_v20  ;;  %v139_v63 = vld [vmem:[#allocation2 + $0x308] sm:$0xff]  ;;  %v138_v4 = vld [vmem:[#allocation2 + $0x300] sm:$0xff]  ;;  %v40_v7 = vld [vmem:[%s897_s0 + $0x30] sm:$0xff] }
  0x3a   :  { %672 = vmatprep.subr.mxu1 %v165_v21  ;;  %638 = vmatpush3.msra.mxu0 %v117_v22  ;;  %v39_v3 = vld [vmem:[%s897_s0 + $0x28] sm:$0xff]  ;;  %v38_v6 = vld [vmem:[%s897_s0 + $0x20] sm:$0xff]  ;;  %v473_v8 = vld [vmem:[%s900_s3 + $0x78] sm:$0xff] }
  0x3b   :  { %673 = vmatpush3.msra.mxu1 %v149_v23  ;;  %639 = vmatprep.subr.mxu0 %v132_v24  ;;  %v472_v10 = vld [vmem:[%s900_s3 + $0x70] sm:$0xff]  ;;  %v471_v11 = vld [vmem:[%s900_s3 + $0x68] sm:$0xff]  ;;  %v470_v12 = vld [vmem:[%s900_s3 + $0x60] sm:$0xff] }
  0x3c   :  { %674 = vmatprep.subr.mxu1 %v164_v25  ;;  %640 = vmatpush3.msra.mxu0 %v116_v26  ;;  %v469_v13 = vld [vmem:[%s900_s3 + $0x58] sm:$0xff]  ;;  %v468_v14 = vld [vmem:[%s900_s3 + $0x50] sm:$0xff]  ;;  %v467_v15 = vld [vmem:[%s900_s3 + $0x48] sm:$0xff] }
  0x3d   :  { %675 = vmatpush3.msra.mxu1 %v148_v27  ;;  %641 = vmatprep.subr.mxu0 %v131_v28  ;;  %v466_v16 = vld [vmem:[%s900_s3 + $0x40] sm:$0xff]  ;;  %v465_v17 = vld [vmem:[%s900_s3 + $0x38] sm:$0xff]  ;;  %v464_v18 = vld [vmem:[%s900_s3 + $0x30] sm:$0xff] }
  0x3e   :  { %676 = vmatprep.subr.mxu1 %v163_v29  ;;  %642 = vmatpush3.msra.mxu0 %v115_v30  ;;  %v463_v19 = vld [vmem:[%s900_s3 + $0x28] sm:$0xff]  ;;  %v462_v20 = vld [vmem:[%s900_s3 + $0x20] sm:$0xff]  ;;  %v461_v21 = vld [vmem:[%s900_s3 + $0x18] sm:$0xff] }
  0x3f   :  { %677 = vmatpush3.msra.mxu1 %v147_v31  ;;  %643 = vmatprep.subr.mxu0 %v130_v32  ;;  %v460_v22 = vld [vmem:[%s900_s3 + $0x10] sm:$0xff]  ;;  %v459_v23 = vld [vmem:[%s900_s3 + $0x8] sm:$0xff]  ;;  %v458_v24 = vld [vmem:[%s900_s3] sm:$0xff] }
  0x40   :  { %678 = vmatprep.subr.mxu1 %v162_v33  ;;  %644 = vmatpush3.msra.mxu0 %v114_v34  ;;  %v557_v29 = vld [vmem:[%s899_s2] ss:$0 sm:$0xff] }
  0x41   :  { %679 = vmatpush3.msra.mxu1 %v146_v35  ;;  %645 = vmatprep.subr.mxu0 %v129_v36 }
  0x42   :  { %680 = vmatprep.subr.mxu1 %v161_v37  ;;  %646 = vmatpush3.msra.mxu0 %v113_v38 }
  0x43   :  { %681 = vmatpush3.msra.mxu1 %v145_v39  ;;  %647 = vmatprep.subr.mxu0 %v128_v40 }
  0x44   :  { %682 = vmatprep.subr.mxu1 %v160_v41  ;;  %648 = vmatpush3.msra.mxu0 %v112_v42 }
  0x45   :  { %683 = vmatpush3.msra.mxu1 %v144_v43  ;;  %649 = vmatprep.subr.mxu0 %v127_v44  ;;  %v558_v43 = vld [vmem:[%s901_s4] ss:$0 sm:$0xff] }
  0x46   :  { %684 = vmatprep.subr.mxu1 %v159_v45  ;;  %650 = vmatpush3.msra.mxu0 %v111_v46 }
  0x47   :  { %685 = vmatpush3.msra.mxu1 %v143_v47  ;;  %651 = vmatprep.subr.mxu0 %v126_v48 }
  0x48   :  { %686 = vmatprep.subr.mxu1 %v158_v49  ;;  %652 = vmatpush3.msra.mxu0 %v110_v50 }
  0x49   :  { %687 = vmatpush3.msra.mxu1 %v142_v51  ;;  %653 = vmatprep.subr.mxu0 %v125_v52 }
  0x4a   :  { %688 = vmatprep.subr.mxu1 %v157_v53  ;;  %654 = vmatpush3.msra.mxu0 %v109_v54 }
  0x4b   :  { %689 = vmatpush3.msra.mxu1 %v141_v55  ;;  %655 = vmatprep.subr.mxu0 %v124_v56 }
  0x4c   :  { %690 = vmatprep.subr.mxu1 %v156_v57  ;;  %656 = vmatpush3.msra.mxu0 %v108_v58 }
  0x4d   :  { %691 = vmatpush3.msra.mxu1 %v140_v59  ;;  %657 = vmatprep.subr.mxu0 %v123_v60 }
  0x4e   :  { %692 = vmatprep.subr.mxu1 %v155_v61  ;;  %658 = vmatpush3.msra.mxu0 %v107_v62 }
  0x4f   :  { %693 = vmatpush3.msra.mxu1 %v139_v63  ;;  %659 = vmatprep.subr.mxu0 %v122_v0 }
  0x50   :  { %694 = vmatprep.subr.mxu1 %v154_v1  ;;  %660 = vmatpush3.msra.mxu0 %v106_v2 }
  0x51   :  { %381 = vmatprep.mubr.f32.mxu0 %v39_v3  ;;  %695 = vmatpush3.msra.mxu1 %v138_v4 }
  0x52   :  { %451 = vmatprep.mubr.f32.mxu1 %v41_v5  ;;  %382 = vmatmul.mubr.f32.vlgmr.msra.gmra.mxu0 %v38_v6 }
  0x53   :  { %452 = vmatmul.mubr.f32.vlgmr.msra.gmra.mxu1 %v40_v7  ;;  %716 = vmatprep.subr.mxu0 %v781_v9 }
  0x54   :  { %717 = vmatpush3.msra.mxu0 %v473_v8  ;;  %748 = vmatprep.mubr.msk.f32.mxu0 %vm782_vm0, %v781_v9 }
  0x55   :  { %718 = vmatprep.subr.mxu0 %v781_v9 }
  0x56   :  { %719 = vmatpush3.msra.mxu0 %v472_v10 }
  0x57   :  { %720 = vmatprep.subr.mxu0 %v781_v9 }
  0x58   :  { %721 = vmatpush3.msra.mxu0 %v471_v11 }
  0x59   :  { %722 = vmatprep.subr.mxu0 %v781_v9 }
  0x5a   :  { %723 = vmatpush3.msra.mxu0 %v470_v12 }
  0x5b   :  { %724 = vmatprep.subr.mxu0 %v781_v9 }
  0x5c   :  { %725 = vmatpush3.msra.mxu0 %v469_v13 }
  0x5d   :  { %726 = vmatprep.subr.mxu0 %v781_v9 }
  0x5e   :  { %727 = vmatpush3.msra.mxu0 %v468_v14 }
  0x5f   :  { %728 = vmatprep.subr.mxu0 %v781_v9 }
  0x60   :  { %729 = vmatpush3.msra.mxu0 %v467_v15 }
  0x61   :  { %730 = vmatprep.subr.mxu0 %v781_v9 }
  0x62   :  { %731 = vmatpush3.msra.mxu0 %v466_v16 }
  0x63   :  { %732 = vmatprep.subr.mxu0 %v781_v9 }
  0x64   :  { %733 = vmatpush3.msra.mxu0 %v465_v17 }
  0x65   :  { %734 = vmatprep.subr.mxu0 %v781_v9 }
  0x66   :  { %735 = vmatpush3.msra.mxu0 %v464_v18 }
  0x67   :  { %736 = vmatprep.subr.mxu0 %v781_v9 }
  0x68   :  { %737 = vmatpush3.msra.mxu0 %v463_v19 }
  0x69   :  { %738 = vmatprep.subr.mxu0 %v781_v9 }
  0x6a   :  { %739 = vmatpush3.msra.mxu0 %v462_v20 }
  0x6b   :  { %740 = vmatprep.subr.mxu0 %v781_v9 }
  0x6c   :  { %741 = vmatpush3.msra.mxu0 %v461_v21 }
  0x6d   :  { %742 = vmatprep.subr.mxu0 %v781_v9 }
  0x6e   :  { %743 = vmatpush3.msra.mxu0 %v460_v22 }
  0x6f   :  { %744 = vmatprep.subr.mxu0 %v781_v9 }
  0x70   :  { %745 = vmatpush3.msra.mxu0 %v459_v23 }
  0x71   :  { %746 = vmatprep.subr.mxu0 %v781_v9 }
  0x72   :  { %747 = vmatpush3.msra.mxu0 %v458_v24 }
  0xf0   :  { %v591_v25 = vpop.f32.mrf.mxu0 }
  0xf2   :  { %v626_v26 = vpop.f32.mrf.mxu1  ;;  %v592_v27 = vpop.f32.mrf.mxu0 }
  0xf3   :  { %v593_v28 = vadd.f32 %v592_v27, %v591_v25 }
  0xf4   :  { %v627_v30 = vpop.f32.mrf.mxu1 }
  0xf5   :  { %v244_v31 = vadd.f32 %v593_v28, %v557_v29  ;;  %v628_v32 = vadd.f32 %v627_v30, %v626_v26 }
  0xf7   :  { %v314_v37 = vadd.f32 %v628_v32, %v244_v31 }
 0x112   :  { %v661_v33 = vpop.f32.mrf.mxu0 }
 0x113   :  { %v696_v34 = vpop.f32.mrf.mxu1 }
 0x114   :  { %v662_v35 = vpop.f32.mrf.mxu0 }
 0x115   :  { %v697_v36 = vpop.f32.mrf.mxu1  ;;  %v663_v38 = vadd.f32 %v662_v35, %v661_v33 }
 0x116   :  { %v698_v40 = vadd.f32 %v697_v36, %v696_v34 }
 0x117   :  { %v384_v39 = vadd.f32 %v663_v38, %v314_v37 }
 0x119   :  { %v454_v41 = vadd.f32 %v698_v40, %v384_v39 }
 0x11b   :  { %v457_v42 = vmax.f32 %v454_v41, 0.0 }
 0x11d   :  { %749 = vmatmul.mubr.f32.vlgmr.msra.gmra.mxu0 %v457_v42 }
 0x1dd   :  { %v547_v44 = vpop.f32.mrf.mxu0 }
 0x1de   :  { %v548_v45 = vadd.f32 %v558_v43, %v547_v44 }
 0x1df   :  { %v750_v46 = vpop.f32.mrf.mxu0 }
 0x1e0   :  { %551 = vst [vmem:[%s902_s5] sm:$0xff] %v548_v45 }
 0x1e1   :  { %556 = vsyncpa [#allocation3], 1 }

</bundles_post_ra>
